<compile_context>
chip_gen: v5e
topology: v5e:2x2
jax: 0.10.0
libtpu: 0.0.40
codegen_flags: <defaults>
</compile_context>

<pallas_src>
import functools

import jax
import jax.numpy as jnp
from jax.experimental import pallas as pl
from jax.experimental.pallas import tpu as pltpu


def _round_up(n: int, m: int) -> int:
    return -(-n // m) * m


def _policy_kernel(x_ref, w1_ref, b1_ref, w2_ref, b2_ref, wh_ref, bh_ref,
                   out_ref):
    """Fused forward, feature-major internally (batch rides the 128-lane axis).

    x_ref  : [tile, state_dim]   batch-major, compute dtype (f32 or bf16)
    w*_ref : PyTorch-layout weights [out, in], compute dtype
    b*_ref : column biases [out, 1], f32
    wh/bh  : fused mu||log_std head ([2A, h1], [2A, 1])
    out_ref: [2A, tile] f32; rows 0..A-1 = mu, rows A..2A-1 = std
    """
    cdt = w1_ref.dtype  # dtype fed to the MXU

    # layer 1 + tanh.  Contract the feature dims of w1 [h0, S] and x [tile, S]
    # -> [h0, tile]; Mosaic handles the operand orientation in-kernel, so the
    # wrapper never materializes x^T in HBM.  f32 accumulation + f32 bias/tanh.
    z1 = jax.lax.dot_general(
        w1_ref[...], x_ref[...],
        dimension_numbers=(((1,), (1,)), ((), ())),
        preferred_element_type=jnp.float32)
    h = jnp.tanh(z1 + b1_ref[...]).astype(cdt)            # [h0, tile], cdt

    # layer 2 + tanh
    z2 = jnp.dot(w2_ref[...], h, preferred_element_type=jnp.float32)
    h = jnp.tanh(z2 + b2_ref[...]).astype(cdt)            # [h1, tile], cdt

    # fused mu / log_std head: one matmul, one lane-dense store.
    head = (jnp.dot(wh_ref[...], h, preferred_element_type=jnp.float32)
            + bh_ref[...])                                # [2A, tile], f32

    a_dim = out_ref.shape[0] // 2
    row = jax.lax.broadcasted_iota(jnp.int32, head.shape, 0)
    # std rows: exp(clip(log_std, -20, 2)); mu rows pass through unclipped.
    std_like = jnp.exp(jnp.clip(head, -20.0, 2.0))
    out_ref[...] = jnp.where(row >= a_dim, std_like, head).astype(out_ref.dtype)


@functools.partial(jax.jit, static_argnames=("batch_tile", "compute_dtype"))
def policy_forward(x, params, batch_tile=None, compute_dtype=jnp.bfloat16):
    """x: [B, state_dim] float32.  params: PyTorch-layout weights ([out, in]),
    column biases ([out, 1]), with the mu/log_std head pre-fused as wh/bh.
    Returns (mu, std), each [B, action_dim] float32."""
    B, state_dim = x.shape
    h0 = params["w1"].shape[0]
    h1 = params["w2"].shape[0]
    two_a = params["wh"].shape[0]
    action_dim = two_a // 2

    # Tile selection: big lane-aligned tiles (<= 8192 rows) and, when the batch
    # spans more than one tile, an even step count so the "parallel" grid axis
    # splits evenly across v7x's two TensorCores.
    if batch_tile is None:
        b_aligned = _round_up(max(B, 1), 128)
        if b_aligned <= 128:
            batch_tile = 128
        else:
            max_tile = 8192
            steps = max(2, pl.cdiv(b_aligned, max_tile))
            steps += steps % 2                      # force an even step count
            batch_tile = _round_up(pl.cdiv(b_aligned, steps), 128)
    assert batch_tile % 128 == 0, "batch_tile must be a multiple of 128 lanes"
    Bp = _round_up(B, batch_tile)

    # Batch-major input; pad rows only (no transpose, no padded re-read later).
    xb = x
    if Bp != B:
        xb = jnp.pad(xb, ((0, Bp - B), (0, 0)))
    xb = xb.astype(compute_dtype)

    # Weights in the MXU compute dtype; biases stay f32.
    w1 = params["w1"].astype(compute_dtype)
    w2 = params["w2"].astype(compute_dtype)
    wh = params["wh"].astype(compute_dtype)
    b1, b2, bh = params["b1"], params["b2"], params["bh"]

    grid = (Bp // batch_tile,)
    full = lambda r, c: pl.BlockSpec((r, c), lambda i: (0, 0))

    itemsize = jnp.dtype(compute_dtype).itemsize
    cost = pl.CostEstimate(
        flops=2 * Bp * (state_dim * h0 + h0 * h1 + h1 * two_a),
        transcendentals=Bp * (h0 + h1 + two_a),
        bytes_accessed=(Bp * state_dim * itemsize           # x
                        + Bp * two_a * 4                    # fused output
                        + (h0 * state_dim + h1 * h0 + two_a * h1) * itemsize
                        + (h0 + h1 + two_a) * 4))           # biases

    fused = pl.pallas_call(
        _policy_kernel,
        grid=grid,
        in_specs=[
            pl.BlockSpec((batch_tile, state_dim), lambda i: (i, 0)),  # x (batch-major)
            full(h0, state_dim), full(h0, 1),                         # w1, b1
            full(h1, h0),        full(h1, 1),                         # w2, b2
            full(two_a, h1),     full(two_a, 1),                      # wh, bh
        ],
        out_specs=pl.BlockSpec((two_a, batch_tile), lambda i: (0, i)),
        out_shape=jax.ShapeDtypeStruct((two_a, Bp), jnp.float32),
        compiler_params=pltpu.CompilerParams(
            dimension_semantics=("parallel",)),
        cost_estimate=cost,
    )(xb, w1, b1, w2, b2, wh, bh)

    # Slice the valid columns *before* transposing so the padded columns never
    # round-trip HBM again; [2A, B] is tiny so this transpose is negligible.
    head = fused[:, :B].T                       # [B, 2A]
    mu = head[:, :action_dim]
    std = head[:, action_dim:]
    return mu, std


def init_params(key, state_dim, action_dim, hidden_dims=(64, 64)):
    """PyTorch-style Linear init (U(-1/sqrt(fan_in), 1/sqrt(fan_in))).
    Weights kept in PyTorch [out, in] layout, biases as [out, 1] columns.
    The mu / log_std head is fused once here (wh / bh) so the per-step forward
    never re-concatenates it."""
    def linear(k, fan_in, fan_out):
        kw, kb = jax.random.split(k)
        bound = 1.0 / jnp.sqrt(float(fan_in))
        w = jax.random.uniform(kw, (fan_out, fan_in), jnp.float32, -bound, bound)
        b = jax.random.uniform(kb, (fan_out, 1), jnp.float32, -bound, bound)
        return w, b

    k1, k2, k3, k4 = jax.random.split(key, 4)
    w1, b1 = linear(k1, state_dim, hidden_dims[0])
    w2, b2 = linear(k2, hidden_dims[0], hidden_dims[1])
    wmu, bmu = linear(k3, hidden_dims[1], action_dim)
    wls, bls = linear(k4, hidden_dims[1], action_dim)
    wh = jnp.concatenate([wmu, wls], axis=0)    # [2A, h1], rows 0..A-1 = mu
    bh = jnp.concatenate([bmu, bls], axis=0)    # [2A, 1]
    return dict(w1=w1, b1=b1, w2=w2, b2=b2, wh=wh, bh=bh)


def policy_forward_ref(x, params):
    """Pure-JAX reference mirroring the PyTorch forward."""
    a_dim = params["wh"].shape[0] // 2
    h = jnp.tanh(x @ params["w1"].T + params["b1"].T)
    h = jnp.tanh(h @ params["w2"].T + params["b2"].T)
    head = h @ params["wh"].T + params["bh"].T
    mu = head[:, :a_dim]
    log_std = jnp.clip(head[:, a_dim:], -20.0, 2.0)
    return mu, jnp.exp(log_std)


if __name__ == "__main__":
    key = jax.random.PRNGKey(0)
    k_param, k_small, k_big = jax.random.split(key, 3)

    state_dim, action_dim = 16, 4
    params = init_params(k_param, state_dim, action_dim, hidden_dims=(64, 64))

    # Small, awkward batch (padding + single-tile path), f32 compute, tight tol.
    x_small = jax.random.normal(k_small, (10, state_dim), jnp.float32)
    mu, std = policy_forward(x_small, params, compute_dtype=jnp.float32)
    jax.block_until_ready((mu, std))
    mu_ref, std_ref = policy_forward_ref(x_small, params)
    assert mu.shape == (10, action_dim) and std.shape == (10, action_dim)
    assert jnp.allclose(mu, mu_ref, atol=1e-5, rtol=1e-5)
    assert jnp.allclose(std, std_ref, atol=1e-5, rtol=1e-5)

    # Larger batch: default bf16 MXU path (f32 accumulation), even 2-step grid.
    x_big = jax.random.normal(k_big, (2500, state_dim), jnp.float32)
    mu_b, std_b = policy_forward(x_big, params)
    jax.block_until_ready((mu_b, std_b))
    mu_bref, std_bref = policy_forward_ref(x_big, params)
    assert jnp.allclose(mu_b, mu_bref, atol=5e-2, rtol=5e-2)
    assert jnp.allclose(std_b, std_bref, atol=5e-2, rtol=5e-2)

    # Same batch in f32 compute to confirm exact agreement with the reference.
    mu_f, std_f = policy_forward(x_big, params, compute_dtype=jnp.float32)
    jax.block_until_ready((mu_f, std_f))
    assert jnp.allclose(mu_f, mu_bref, atol=1e-5, rtol=1e-5)
    assert jnp.allclose(std_f, std_bref, atol=1e-5, rtol=1e-5)

    print("KERNEL_OK")
</pallas_src>

<mosaic_0001>
module attributes {stable_mosaic.version = 11 : i64} {
  func.func @_policy_kernel(%arg0: i32, %arg1: memref<128x16xf32, #tpu.memory_space<vmem>>, %arg2: memref<64x16xf32, #tpu.memory_space<vmem>>, %arg3: memref<64x1xf32, #tpu.memory_space<vmem>>, %arg4: memref<64x64xf32, #tpu.memory_space<vmem>>, %arg5: memref<64x1xf32, #tpu.memory_space<vmem>>, %arg6: memref<8x64xf32, #tpu.memory_space<vmem>>, %arg7: memref<8x1xf32, #tpu.memory_space<vmem>>, %arg8: memref<8x128xf32, #tpu.memory_space<vmem>>) attributes {dimension_semantics = [#tpu.dimension_semantics<parallel>], iteration_bounds = array<i64: 1>, scalar_prefetch = 0 : i64, scratch_operands = 0 : i64, tpu.core_type = #tpu.core_type<tc>, window_params = [{transform_indices = @transform_0, window_bounds = array<i64: 128, 16>}, {pipeline_mode = #tpu.pipeline_mode<synchronous>, transform_indices = @transform_1, window_bounds = array<i64: 64, 16>}, {pipeline_mode = #tpu.pipeline_mode<synchronous>, transform_indices = @transform_2, window_bounds = array<i64: 64, 1>}, {pipeline_mode = #tpu.pipeline_mode<synchronous>, transform_indices = @transform_3, window_bounds = array<i64: 64, 64>}, {pipeline_mode = #tpu.pipeline_mode<synchronous>, transform_indices = @transform_4, window_bounds = array<i64: 64, 1>}, {pipeline_mode = #tpu.pipeline_mode<synchronous>, transform_indices = @transform_5, window_bounds = array<i64: 8, 64>}, {pipeline_mode = #tpu.pipeline_mode<synchronous>, transform_indices = @transform_6, window_bounds = array<i64: 8, 1>}, {transform_indices = @transform_7, window_bounds = array<i64: 8, 128>}]} {
    %c0 = arith.constant 0 : index
    %c0_0 = arith.constant 0 : index
    %0 = vector.load %arg2[%c0, %c0_0] : memref<64x16xf32, #tpu.memory_space<vmem>>, vector<64x16xf32>
    %c0_1 = arith.constant 0 : index
    %c0_2 = arith.constant 0 : index
    %1 = vector.load %arg1[%c0_1, %c0_2] : memref<128x16xf32, #tpu.memory_space<vmem>>, vector<128x16xf32>
    %cst = arith.constant dense<0.000000e+00> : vector<64x128xf32>
    %2 = tpu.matmul %0, %1, %cst {dimension_numbers = #tpu.dot_dimension_numbers<[1], [1], [0], [0], [0, 0, 1, 0], [], []>} : vector<64x16xf32>, vector<128x16xf32>, vector<64x128xf32> -> vector<64x128xf32>
    %c0_3 = arith.constant 0 : index
    %c0_4 = arith.constant 0 : index
    %3 = vector.load %arg3[%c0_3, %c0_4] : memref<64x1xf32, #tpu.memory_space<vmem>>, vector<64x1xf32>
    %4 = vector.broadcast %3 : vector<64x1xf32> to vector<64x128xf32>
    %5 = arith.addf %2, %4 : vector<64x128xf32>
    %6 = math.tanh %5 : vector<64x128xf32>
    %c0_5 = arith.constant 0 : index
    %c0_6 = arith.constant 0 : index
    %7 = vector.load %arg4[%c0_5, %c0_6] : memref<64x64xf32, #tpu.memory_space<vmem>>, vector<64x64xf32>
    %cst_7 = arith.constant dense<0.000000e+00> : vector<64x128xf32>
    %8 = tpu.matmul %7, %6, %cst_7 {dimension_numbers = #tpu.dot_dimension_numbers<[1], [0], [0], [1], [0, 0, 1, 1], [], []>} : vector<64x64xf32>, vector<64x128xf32>, vector<64x128xf32> -> vector<64x128xf32>
    %c0_8 = arith.constant 0 : index
    %c0_9 = arith.constant 0 : index
    %9 = vector.load %arg5[%c0_8, %c0_9] : memref<64x1xf32, #tpu.memory_space<vmem>>, vector<64x1xf32>
    %10 = vector.broadcast %9 : vector<64x1xf32> to vector<64x128xf32>
    %11 = arith.addf %8, %10 : vector<64x128xf32>
    %12 = math.tanh %11 : vector<64x128xf32>
    %c0_10 = arith.constant 0 : index
    %c0_11 = arith.constant 0 : index
    %13 = vector.load %arg6[%c0_10, %c0_11] : memref<8x64xf32, #tpu.memory_space<vmem>>, vector<8x64xf32>
    %cst_12 = arith.constant dense<0.000000e+00> : vector<8x128xf32>
    %14 = tpu.matmul %13, %12, %cst_12 {dimension_numbers = #tpu.dot_dimension_numbers<[1], [0], [0], [1], [0, 0, 1, 1], [], []>} : vector<8x64xf32>, vector<64x128xf32>, vector<8x128xf32> -> vector<8x128xf32>
    %c0_13 = arith.constant 0 : index
    %c0_14 = arith.constant 0 : index
    %15 = vector.load %arg7[%c0_13, %c0_14] : memref<8x1xf32, #tpu.memory_space<vmem>>, vector<8x1xf32>
    %16 = vector.broadcast %15 : vector<8x1xf32> to vector<8x128xf32>
    %17 = arith.addf %14, %16 : vector<8x128xf32>
    %18 = tpu.iota {dimensions = array<i32: 0>} : vector<8x128xi32>
    %cst_15 = arith.constant -2.000000e+01 : f32
    %cst_16 = arith.constant 2.000000e+00 : f32
    %19 = vector.broadcast %cst_15 : f32 to vector<8x128xf32>
    %20 = arith.maximumf %19, %17 : vector<8x128xf32>
    %21 = vector.broadcast %cst_16 : f32 to vector<8x128xf32>
    %22 = arith.minimumf %21, %20 : vector<8x128xf32>
    %23 = math.exp %22 : vector<8x128xf32>
    %c4_i32 = arith.constant 4 : i32
    %24 = vector.broadcast %c4_i32 : i32 to vector<8x128xi32>
    %25 = arith.cmpi sge, %18, %24 : vector<8x128xi32>
    %26 = arith.select %25, %23, %17 : vector<8x128xi1>, vector<8x128xf32>
    %c0_17 = arith.constant 0 : index
    %c0_18 = arith.constant 0 : index
    %27 = vector.load %arg8[%c0_17, %c0_18] : memref<8x128xf32, #tpu.memory_space<vmem>>, vector<8x128xf32>
    tpu.vector_store %arg8[%c0_17, %c0_18], %26 {strides = array<i32>} : memref<8x128xf32, #tpu.memory_space<vmem>>, vector<8x128xf32>,
    return
  }
  func.func @transform_0(%arg0: i32) -> (i32, i32) {
    %c0_i32 = arith.constant 0 : i32
    %c0_i32_0 = arith.constant 0 : i32
    return %arg0, %c0_i32 : i32, i32
  }
  func.func @transform_1(%arg0: i32) -> (i32, i32) {
    %c0_i32 = arith.constant 0 : i32
    %c0_i32_0 = arith.constant 0 : i32
    %c0_i32_1 = arith.constant 0 : i32
    return %c0_i32, %c0_i32_0 : i32, i32
  }
  func.func @transform_2(%arg0: i32) -> (i32, i32) {
    %c0_i32 = arith.constant 0 : i32
    %c0_i32_0 = arith.constant 0 : i32
    %c0_i32_1 = arith.constant 0 : i32
    return %c0_i32, %c0_i32_0 : i32, i32
  }
  func.func @transform_3(%arg0: i32) -> (i32, i32) {
    %c0_i32 = arith.constant 0 : i32
    %c0_i32_0 = arith.constant 0 : i32
    %c0_i32_1 = arith.constant 0 : i32
    return %c0_i32, %c0_i32_0 : i32, i32
  }
  func.func @transform_4(%arg0: i32) -> (i32, i32) {
    %c0_i32 = arith.constant 0 : i32
    %c0_i32_0 = arith.constant 0 : i32
    %c0_i32_1 = arith.constant 0 : i32
    return %c0_i32, %c0_i32_0 : i32, i32
  }
  func.func @transform_5(%arg0: i32) -> (i32, i32) {
    %c0_i32 = arith.constant 0 : i32
    %c0_i32_0 = arith.constant 0 : i32
    %c0_i32_1 = arith.constant 0 : i32
    return %c0_i32, %c0_i32_0 : i32, i32
  }
  func.func @transform_6(%arg0: i32) -> (i32, i32) {
    %c0_i32 = arith.constant 0 : i32
    %c0_i32_0 = arith.constant 0 : i32
    %c0_i32_1 = arith.constant 0 : i32
    return %c0_i32, %c0_i32_0 : i32, i32
  }
  func.func @transform_7(%arg0: i32) -> (i32, i32) {
    %c0_i32 = arith.constant 0 : i32
    %c0_i32_0 = arith.constant 0 : i32
    return %c0_i32, %arg0 : i32, i32
  }
}

</mosaic_0001>

<bundles_post_ra>
// kernel: policy_forward.1
= control target key start
LH: loop header
LB: loop body
LE: loop exit
PB: predicated region body
PF: predicated region fallthrough
CT: control target
= control target key end

     0   :  { %vm98_vm0 = vcmask 130048   ;;  %v496_v7 = vmov 0   ;;  %vm276_vm1 = vcmask 523264   ;;  %s755_s0 = inlined_call_operand.vmem [shape: f32[128,16], index: 0, kind: input, shape index: {}]   ;;  %s756_s2 = inlined_call_operand.vmem [shape: f32[64,1], index: 2, kind: input, shape index: {}]   ;;  %s757_s4 = inlined_call_operand.vmem [shape: f32[64,1], index: 4, kind: input, shape index: {}]   ;;  %s758_s6 = inlined_call_operand.vmem [shape: f32[8,1], index: 6, kind: input, shape index: {}]   ;;  %s759_s1 = inlined_call_operand.vmem [shape: f32[64,16], index: 1, kind: input, shape index: {}]   ;;  %s760_s3 = inlined_call_operand.vmem [shape: f32[64,64], index: 3, kind: input, shape index: {}]   ;;  %s761_s5 = inlined_call_operand.vmem [shape: f32[8,64], index: 5, kind: input, shape index: {}]   ;;  %s762_s7 = inlined_call_operand.vmem [shape: f32[8,128], index: 7, kind: output, shape index: {}]  }
   0x1   :  { %v49_v0 = vld [vmem:[%s755_s0 + $0x78] sm:$0xff]  ;;  %v48_v1 = vld [vmem:[%s755_s0 + $0x70] sm:$0xff]  ;;  %v47_v2 = vld [vmem:[%s755_s0 + $0x68] sm:$0xff]  ;;  %459 = vset.pattern.permute.xlu0 %v496_v7  ;;  %460 = vset.pattern.permute.xlu1 %v496_v7 }
   0x2   :  { %427 = vmatpush.xpose.msk.msra.mxu3 %vm98_vm0, %v49_v0  ;;  %426 = vmatpush.xpose.msk.msra.mxu2 %vm98_vm0, %v49_v0  ;;  %v46_v3 = vld [vmem:[%s755_s0 + $0x60] sm:$0xff]  ;;  %v45_v4 = vld [vmem:[%s755_s0 + $0x58] sm:$0xff]  ;;  %v44_v6 = vld [vmem:[%s755_s0 + $0x50] sm:$0xff] }
   0x3   :  { %393 = vmatpush.xpose.msk.msra.mxu0 %vm98_vm0, %v49_v0  ;;  %v57_v5 = vld [vmem:[%s756_s2 + $0x38] sm:$0xff]  ;;  %461 = vset.pattern.permute.xlu2 %v496_v7  ;;  %v55_v8 = vld [vmem:[%s756_s2 + $0x28] sm:$0xff]  ;;  %v56_v10 = vld [vmem:[%s756_s2 + $0x30] sm:$0xff] }
   0x4   :  { %95 = vperm.xlu0 %459, %v57_v5   ;;  %v43_v9 = vld [vmem:[%s755_s0 + $0x48] sm:$0xff]  ;;  %85 = vperm.xlu1 %460, %v55_v8   ;;  %v42_v11 = vld [vmem:[%s755_s0 + $0x40] sm:$0xff]  ;;  %v41_v13 = vld [vmem:[%s755_s0 + $0x38] sm:$0xff] }
   0x5   :  { %v54_v12 = vld [vmem:[%s756_s2 + $0x20] sm:$0xff]  ;;  %v51_v14 = vld [vmem:[%s756_s2 + $0x8] sm:$0xff]  ;;  %v40_v15 = vld [vmem:[%s755_s0 + $0x30] sm:$0xff] }
   0x6   :  { %429 = vmatpush.xpose.msk.msra.mxu3 %vm98_vm0, %v48_v1  ;;  %428 = vmatpush.xpose.msk.msra.mxu2 %vm98_vm0, %v48_v1  ;;  %v50_v16 = vld [vmem:[%s756_s2] sm:$0xff]  ;;  %v39_v17 = vld [vmem:[%s755_s0 + $0x28] sm:$0xff]  ;;  %v234_v18 = vld [vmem:[%s757_s4 + $0x30] sm:$0xff] }
   0x7   :  { %394 = vmatpush.xpose.msk.msra.mxu0 %vm98_vm0, %v48_v1  ;;  %v38_v19 = vld [vmem:[%s755_s0 + $0x20] sm:$0xff]  ;;  %v233_v20 = vld [vmem:[%s757_s4 + $0x28] sm:$0xff]  ;;  %v37_v21 = vld [vmem:[%s755_s0 + $0x18] sm:$0xff] }
   0x8   :  { %v231_v22 = vld [vmem:[%s757_s4 + $0x18] sm:$0xff]  ;;  %v36_v24 = vld [vmem:[%s755_s0 + $0x10] sm:$0xff]  ;;  %v35_v26 = vld [vmem:[%s755_s0 + $0x8] sm:$0xff] }
   0x9   :  { %v53_v23 = vld [vmem:[%s756_s2 + $0x18] sm:$0xff]  ;;  %v230_v25 = vld [vmem:[%s757_s4 + $0x10] sm:$0xff]  ;;  %v228_v28 = vld [vmem:[%s757_s4] sm:$0xff] }
   0xa   :  { %431 = vmatpush.xpose.msk.msra.mxu3 %vm98_vm0, %v47_v2  ;;  %430 = vmatpush.xpose.msk.msra.mxu2 %vm98_vm0, %v47_v2  ;;  %v52_v27 = vld [vmem:[%s756_s2 + $0x10] sm:$0xff]  ;;  %v34_v29 = vld [vmem:[%s755_s0] sm:$0xff]  ;;  %v31_v31 = vld [vmem:[%s759_s1 + $0x28] sm:$0xff] }
   0xb   :  { %395 = vmatpush.xpose.msk.msra.mxu0 %vm98_vm0, %v47_v2  ;;  %75 = vperm.xlu2 %461, %v53_v23   ;;  %v351_v30 = vld [vmem:[%s758_s6] sm:$0xff]  ;;  %v29_v32 = vld [vmem:[%s759_s1 + $0x18] sm:$0xff]  ;;  %v32_v35 = vld [vmem:[%s759_s1 + $0x30] sm:$0xff] }
   0xc   :  { %90 = vperm.xlu0 %459, %v56_v10   ;;  %80 = vperm.xlu1 %460, %v54_v12   ;;  %v26_v33 = vld [vmem:[%s759_s1] sm:$0xff]  ;;  %v235_v34 = vld [vmem:[%s757_s4 + $0x38] sm:$0xff]  ;;  %v27_v37 = vld [vmem:[%s759_s1 + $0x8] sm:$0xff] }
   0xd   :  { %v30_v36 = vld [vmem:[%s759_s1 + $0x20] sm:$0xff]  ;;  %v33_v39 = vld [vmem:[%s759_s1 + $0x38] sm:$0xff]  ;;  %v28_v40 = vld [vmem:[%s759_s1 + $0x10] sm:$0xff] }
   0xe   :  { %433 = vmatpush.xpose.msk.msra.mxu3 %vm98_vm0, %v46_v3  ;;  %432 = vmatpush.xpose.msk.msra.mxu2 %vm98_vm0, %v46_v3  ;;  %v232_v38 = vld [vmem:[%s757_s4 + $0x20] sm:$0xff]  ;;  %v229_v41 = vld [vmem:[%s757_s4 + $0x8] sm:$0xff]  ;;  %v222_v12 = vld [vmem:[%s760_s3 + $0x10] sm:$0xff] }
   0xf   :  { %396 = vmatpush.xpose.msk.msra.mxu0 %vm98_vm0, %v46_v3 }
  0x12   :  { %435 = vmatpush.xpose.msk.msra.mxu3 %vm98_vm0, %v45_v4  ;;  %434 = vmatpush.xpose.msk.msra.mxu2 %vm98_vm0, %v45_v4 }
  0x13   :  { %397 = vmatpush.xpose.msk.msra.mxu0 %vm98_vm0, %v45_v4  ;;  %70 = vperm.xlu2 %461, %v52_v27  }
  0x14   :  { %65 = vperm.xlu0 %459, %v51_v14   ;;  %60 = vperm.xlu1 %460, %v50_v16   ;;  %v224_v14 = vld [vmem:[%s760_s3 + $0x20] sm:$0xff]  ;;  %v226_v16 = vld [vmem:[%s760_s3 + $0x30] sm:$0xff] }
  0x16   :  { %437 = vmatpush.xpose.msk.msra.mxu3 %vm98_vm0, %v44_v6  ;;  %436 = vmatpush.xpose.msk.msra.mxu2 %vm98_vm0, %v44_v6 }
  0x17   :  { %398 = vmatpush.xpose.msk.msra.mxu0 %vm98_vm0, %v44_v6 }
  0x1a   :  { %439 = vmatpush.xpose.msk.msra.mxu3 %vm98_vm0, %v43_v9  ;;  %438 = vmatpush.xpose.msk.msra.mxu2 %vm98_vm0, %v43_v9 }
  0x1b   :  { %399 = vmatpush.xpose.msk.msra.mxu0 %vm98_vm0, %v43_v9  ;;  %273 = vperm.xlu2 %461, %v235_v34   ;;  %v220_v9 = vld [vmem:[%s760_s3] sm:$0xff] }
  0x1c   :  { %268 = vperm.xlu0 %459, %v234_v18   ;;  %263 = vperm.xlu1 %460, %v233_v20  }
  0x1e   :  { %441 = vmatpush.xpose.msk.msra.mxu3 %vm98_vm0, %v42_v11  ;;  %440 = vmatpush.xpose.msk.msra.mxu2 %vm98_vm0, %v42_v11 }
  0x1f   :  { %400 = vmatpush.xpose.msk.msra.mxu0 %vm98_vm0, %v42_v11  ;;  %v221_v11 = vld [vmem:[%s760_s3 + $0x8] sm:$0xff] }
  0x22   :  { %443 = vmatpush.xpose.msk.msra.mxu3 %vm98_vm0, %v41_v13  ;;  %442 = vmatpush.xpose.msk.msra.mxu2 %vm98_vm0, %v41_v13 }
  0x23   :  { %401 = vmatpush.xpose.msk.msra.mxu0 %vm98_vm0, %v41_v13  ;;  %258 = vperm.xlu2 %461, %v232_v38   ;;  %v223_v13 = vld [vmem:[%s760_s3 + $0x18] sm:$0xff] }
  0x24   :  { %253 = vperm.xlu0 %459, %v231_v22   ;;  %248 = vperm.xlu1 %460, %v230_v25  }
  0x26   :  { %445 = vmatpush.xpose.msk.msra.mxu3 %vm98_vm0, %v40_v15  ;;  %444 = vmatpush.xpose.msk.msra.mxu2 %vm98_vm0, %v40_v15 }
  0x27   :  { %402 = vmatpush.xpose.msk.msra.mxu0 %vm98_vm0, %v40_v15  ;;  %v225_v15 = vld [vmem:[%s760_s3 + $0x28] sm:$0xff] }
  0x2a   :  { %447 = vmatpush.xpose.msk.msra.mxu3 %vm98_vm0, %v39_v17  ;;  %446 = vmatpush.xpose.msk.msra.mxu2 %vm98_vm0, %v39_v17 }
  0x2b   :  { %403 = vmatpush.xpose.msk.msra.mxu0 %vm98_vm0, %v39_v17  ;;  %243 = vperm.xlu2 %461, %v229_v41   ;;  %v227_v17 = vld [vmem:[%s760_s3 + $0x38] sm:$0xff] }
  0x2c   :  { %238 = vperm.xlu0 %459, %v228_v28   ;;  %354 = vperm.xlu1 %460, %v351_v30  }
  0x2e   :  { %449 = vmatpush.xpose.msk.msra.mxu3 %vm98_vm0, %v38_v19  ;;  %448 = vmatpush.xpose.msk.msra.mxu2 %vm98_vm0, %v38_v19 }
  0x2f   :  { %404 = vmatpush.xpose.msk.msra.mxu0 %vm98_vm0, %v38_v19 }
  0x32   :  { %451 = vmatpush.xpose.msk.msra.mxu3 %vm98_vm0, %v37_v21  ;;  %450 = vmatpush.xpose.msk.msra.mxu2 %vm98_vm0, %v37_v21 }
  0x33   :  { %405 = vmatpush.xpose.msk.msra.mxu0 %vm98_vm0, %v37_v21 }
  0x36   :  { %453 = vmatpush.xpose.msk.msra.mxu3 %vm98_vm0, %v36_v24  ;;  %452 = vmatpush.xpose.msk.msra.mxu2 %vm98_vm0, %v36_v24 }
  0x37   :  { %406 = vmatpush.xpose.msk.msra.mxu0 %vm98_vm0, %v36_v24 }
  0x3a   :  { %455 = vmatpush.xpose.msk.msra.mxu3 %vm98_vm0, %v35_v26  ;;  %454 = vmatpush.xpose.msk.msra.mxu2 %vm98_vm0, %v35_v26 }
  0x3b   :  { %407 = vmatpush.xpose.msk.msra.mxu0 %vm98_vm0, %v35_v26 }
  0x3e   :  { %457 = vmatpush.xpose.msk.msra.mxu3 %vm98_vm0, %v34_v29  ;;  %456 = vmatpush.xpose.msk.msra.mxu2 %vm98_vm0, %v34_v29 }
  0x3f   :  { %408 = vmatpush.xpose.msk.msra.mxu0 %vm98_vm0, %v34_v29 }
  0x41   :  { %414 = vmatmul.msk.f32.vlgmr.msra.gmra.mxu3 %vm98_vm0, %v31_v31  ;;  %412 = vmatmul.msk.f32.vlgmr.msra.gmra.mxu2 %vm98_vm0, %v29_v32 }
  0x42   :  { %409 = vmatmul.msk.f32.vlgmr.msra.gmra.mxu0 %vm98_vm0, %v26_v33 }
  0x49   :  { %415 = vmatmul.msk.f32.gmra.mxu3 %vm98_vm0, %v32_v35  ;;  %413 = vmatmul.msk.f32.gmra.mxu2 %vm98_vm0, %v30_v36 }
  0x4a   :  { %410 = vmatmul.msk.f32.gmra.mxu0 %vm98_vm0, %v27_v37 }
  0x51   :  { %416 = vmatmul.msk.f32.gmra.mxu3 %vm98_vm0, %v33_v39 }
  0x52   :  { %411 = vmatmul.msk.f32.gmra.mxu0 %vm98_vm0, %v28_v40 }
  0x65   :  { %v76_v49 = vpop.permute.xlu2 %75 }
  0x6d   :  { %v71_v60 = vpop.permute.xlu2 %70 }
  0x75   :  { %v274_v24 = vpop.permute.xlu2 %273 }
  0x76   :  { %v96_v44 = vpop.permute.xlu0 %95  ;;  %v86_v45 = vpop.permute.xlu1 %85 }
  0x7d   :  { %v259_v28 = vpop.permute.xlu2 %258 }
  0x7e   :  { %v91_v50 = vpop.permute.xlu0 %90  ;;  %v81_v54 = vpop.permute.xlu1 %80 }
  0x85   :  { %v244_v39 = vpop.permute.xlu2 %243 }
  0x86   :  { %v66_v63 = vpop.permute.xlu0 %65  ;;  %v61_v2 = vpop.permute.xlu1 %60 }
  0x8e   :  { %v269_v25 = vpop.permute.xlu0 %268  ;;  %v264_v27 = vpop.permute.xlu1 %263 }
  0x96   :  { %v254_v32 = vpop.permute.xlu0 %253  ;;  %v249_v36 = vpop.permute.xlu1 %248 }
  0xbf   :  { %v188_v43 = vpop.f32.mrf.mxu0 }
  0xc0   :  { %v189_v4 = vadd.f32 %v188_v43, %v61_v2 }
  0xc4   :  { %v203_v42 = vpop.f32.mrf.mxu3  ;;  %v197_v46 = vpop.f32.mrf.mxu2 }
  0xc5   :  { %v204_v56 = vadd.f32 %v203_v42, %v86_v45  ;;  %v198_v59 = vadd.f32 %v197_v46, %v76_v49  ;;  %v239_v42 = vpop.permute.xlu0 %238  ;;  %v350_v49 = vld [vmem:[%s761_s5] sm:$0xff] }
  0xc7   :  { %v191_v48 = vpop.f32.mrf.mxu0 }
  0xc8   :  { %v192_v1 = vadd.f32 %v191_v48, %v66_v63 }
  0xcc   :  { %v206_v47 = vpop.f32.mrf.mxu3  ;;  %v200_v55 = vpop.f32.mrf.mxu2 }
  0xcd   :  { %v207_v52 = vadd.f32 %v206_v47, %v91_v50  ;;  %v201_v57 = vadd.f32 %v200_v55, %v81_v54  ;;  %v380_v55 = vlaneseq }
  0xcf   :  { %v194_v58 = vpop.f32.mrf.mxu0 }
  0xd0   :  { %v195_v62 = vadd.f32 %v194_v58, %v71_v60  ;;  %v381_v58 = vshrl.u32 %v380_v55, 7 }
  0xd2   :  { %vm386_vm2 = vcmp.ge.s32.totalorder %v381_v58, 4 }
  0xd4   :  { %v209_v51 = vpop.f32.mrf.mxu3 }
  0xd5   :  { %v210_v53 = vadd.f32 %v209_v51, %v96_v44  ;;  %v355_v51 = vpop.permute.xlu1 %354 }
  0xd7   :  { %462 = vtanh.f32 %v210_v53 }
  0xd8   :  { %464 = vtanh.f32 %v207_v52 }
  0xd9   :  { %466 = vtanh.f32 %v204_v56 }
  0xda   :  { %468 = vtanh.f32 %v201_v57 }
  0xdb   :  { %470 = vtanh.f32 %v198_v59 }
  0xdc   :  { %472 = vtanh.f32 %v195_v62 }
  0xdd   :  { %v463_v61 = vpop.eup %462  ;;  %474 = vtanh.f32 %v192_v1 }
  0xde   :  { %309 = vmatpush.msra.mxu1 %v463_v61  ;;  %v465_v0 = vpop.eup %464  ;;  %476 = vtanh.f32 %v189_v4 }
  0xdf   :  { %v467_v3 = vpop.eup %466 }
  0xe0   :  { %310 = vmatpush.msra.mxu1 %v465_v0  ;;  %v469_v5 = vpop.eup %468 }
  0xe1   :  { %v471_v6 = vpop.eup %470 }
  0xe2   :  { %311 = vmatpush.msra.mxu1 %v467_v3  ;;  %v473_v7 = vpop.eup %472 }
  0xe3   :  { %v475_v8 = vpop.eup %474 }
  0xe4   :  { %312 = vmatpush.msra.mxu1 %v469_v5  ;;  %v477_v10 = vpop.eup %476 }
  0xe6   :  { %313 = vmatpush.msra.mxu1 %v471_v6 }
  0xe8   :  { %314 = vmatpush.msra.mxu1 %v473_v7 }
  0xea   :  { %315 = vmatpush.msra.mxu1 %v475_v8 }
  0xec   :  { %316 = vmatpush.msra.mxu1 %v477_v10 }
  0xed   :  { %417 = vmatmul.msk.f32.vlgmr.msra.gmra.mxu1 %vm276_vm1, %v220_v9 }
  0xf5   :  { %418 = vmatmul.msk.f32.gmra.mxu1 %vm276_vm1, %v221_v11 }
  0xfd   :  { %419 = vmatmul.msk.f32.gmra.mxu1 %vm276_vm1, %v222_v12 }
 0x105   :  { %420 = vmatmul.msk.f32.gmra.mxu1 %vm276_vm1, %v223_v13 }
 0x10d   :  { %421 = vmatmul.msk.f32.gmra.mxu1 %vm276_vm1, %v224_v14 }
 0x115   :  { %422 = vmatmul.msk.f32.gmra.mxu1 %vm276_vm1, %v225_v15 }
 0x11d   :  { %423 = vmatmul.msk.f32.gmra.mxu1 %vm276_vm1, %v226_v16 }
 0x125   :  { %424 = vmatmul.msk.f32.gmra.mxu1 %vm276_vm1, %v227_v17 }
 0x16a   :  { %v318_v18 = vpop.f32.mrf.mxu1 }
 0x16b   :  { %v319_v44 = vadd.f32 %v318_v18, %v239_v42 }
 0x172   :  { %v321_v19 = vpop.f32.mrf.mxu1 }
 0x173   :  { %v322_v41 = vadd.f32 %v321_v19, %v244_v39 }
 0x17a   :  { %v324_v20 = vpop.f32.mrf.mxu1 }
 0x17b   :  { %v325_v38 = vadd.f32 %v324_v20, %v249_v36 }
 0x182   :  { %v327_v21 = vpop.f32.mrf.mxu1 }
 0x183   :  { %v328_v35 = vadd.f32 %v327_v21, %v254_v32 }
 0x18a   :  { %v330_v22 = vpop.f32.mrf.mxu1 }
 0x18b   :  { %v331_v34 = vadd.f32 %v330_v22, %v259_v28 }
 0x192   :  { %v333_v23 = vpop.f32.mrf.mxu1 }
 0x193   :  { %v334_v33 = vadd.f32 %v333_v23, %v264_v27 }
 0x19a   :  { %v336_v26 = vpop.f32.mrf.mxu1 }
 0x19b   :  { %v337_v30 = vadd.f32 %v336_v26, %v269_v25 }
 0x1a2   :  { %v339_v29 = vpop.f32.mrf.mxu1 }
 0x1a3   :  { %v340_v31 = vadd.f32 %v339_v29, %v274_v24 }
 0x1a5   :  { %478 = vtanh.f32 %v340_v31 }
 0x1a6   :  { %480 = vtanh.f32 %v337_v30 }
 0x1a7   :  { %482 = vtanh.f32 %v334_v33 }
 0x1a8   :  { %484 = vtanh.f32 %v331_v34 }
 0x1a9   :  { %486 = vtanh.f32 %v328_v35 }
 0x1aa   :  { %488 = vtanh.f32 %v325_v38 }
 0x1ab   :  { %v479_v37 = vpop.eup %478  ;;  %490 = vtanh.f32 %v322_v41 }
 0x1ac   :  { %368 = vmatpush.msrb.mxu2 %v479_v37  ;;  %v481_v40 = vpop.eup %480  ;;  %492 = vtanh.f32 %v319_v44 }
 0x1ad   :  { %v483_v43 = vpop.eup %482 }
 0x1ae   :  { %369 = vmatpush.msrb.mxu2 %v481_v40  ;;  %v485_v45 = vpop.eup %484 }
 0x1af   :  { %v487_v46 = vpop.eup %486 }
 0x1b0   :  { %370 = vmatpush.msrb.mxu2 %v483_v43  ;;  %v489_v47 = vpop.eup %488 }
 0x1b1   :  { %v491_v48 = vpop.eup %490 }
 0x1b2   :  { %371 = vmatpush.msrb.mxu2 %v485_v45  ;;  %v493_v50 = vpop.eup %492 }
 0x1b4   :  { %372 = vmatpush.msrb.mxu2 %v487_v46 }
 0x1b6   :  { %373 = vmatpush.msrb.mxu2 %v489_v47 }
 0x1b8   :  { %374 = vmatpush.msrb.mxu2 %v491_v48 }
 0x1ba   :  { %375 = vmatpush.msrb.mxu2 %v493_v50 }
 0x1bb   :  { %425 = vmatmul.msk.f32.vlgmr.msrb.gmra.mxu2 %vm276_vm1, %v350_v49 }
 0x23e   :  { %v377_v52 = vpop.f32.mrf.mxu2 }
 0x23f   :  { %v378_v53 = vadd.f32 %v377_v52, %v355_v51 }
 0x241   :  { %v382_v54 = vmax.f32 %v378_v53, -20.0 }
 0x243   :  { %v383_v56 = vmin.f32 %v382_v54, 2.0 }
 0x245   :  { %v384_v57 = vmul.f32 1.442695, %v383_v56 }
 0x247   :  { %494 = vpow2.f32 %v384_v57 }
 0x24d   :  { %v495_v59 = vpop.eup %494 }
 0x24e   :  { %v387_v60 = vsel %vm386_vm2, %v495_v59, %v378_v53 }
 0x24f   :  { %388 = vst [vmem:[%s762_s7] sm:$0xff] %v387_v60 }

</bundles_post_ra>
